<compile_context>
chip_gen: v5e
topology: v5e:2x2
jax: 0.10.0
libtpu: 0.0.40
codegen_flags: <defaults>
</compile_context>

<pallas_src>
import functools

import jax
import jax.numpy as jnp
from jax.experimental import pallas as pl
from jax.experimental.pallas import tpu as pltpu


def _fused_linear_kernel(x_ref, w_ref, b_ref, o_ref, *, precision):
    """One batch tile: (tb, D) @ (D, Np) + (1, Np) -> (tb, Np), lane-dense."""
    y = jnp.dot(x_ref[...], w_ref[...],
                preferred_element_type=jnp.float32,
                precision=precision)
    o_ref[...] = (y + b_ref[...]).astype(o_ref.dtype)


def _choose_batch_tile(batch, block_b):
    """Batch tile: multiple of 8, <= block_b, >= 2 tiles when possible (v7x)."""
    if batch <= 8:
        return batch                        # single tile == full batch dim
    tb = max(8, (min(block_b, batch) // 8) * 8)
    if pl.cdiv(batch, tb) < 2:              # give v7x's second TensorCore work
        tb = max(8, (((batch + 1) // 2 + 7) // 8) * 8)
    return tb


def _run_fused(x, w_cat, b_cat, *, tb, n_pad, out_dtype, vmem_limit, cost,
               precision, single_buffer_params):
    B, D = x.shape
    grid = (pl.cdiv(B, tb),)

    x_spec = pl.BlockSpec((tb, D), lambda i: (i, 0))
    o_spec = pl.BlockSpec((tb, n_pad), lambda i: (i, 0))
    if single_buffer_params:
        # Grid-invariant params: double-buffering buys nothing, halve VMEM use.
        w_spec = pl.BlockSpec((D, n_pad), lambda i: (0, 0),
                              pipeline_mode=pl.Buffered(1))
        b_spec = pl.BlockSpec((1, n_pad), lambda i: (0, 0),
                              pipeline_mode=pl.Buffered(1))
    else:
        w_spec = pl.BlockSpec((D, n_pad), lambda i: (0, 0))
        b_spec = pl.BlockSpec((1, n_pad), lambda i: (0, 0))

    return pl.pallas_call(
        functools.partial(_fused_linear_kernel, precision=precision),
        out_shape=jax.ShapeDtypeStruct((B, n_pad), out_dtype),
        grid_spec=pltpu.PrefetchScalarGridSpec(
            num_scalar_prefetch=0,
            grid=grid,
            in_specs=[x_spec, w_spec, b_spec],
            out_specs=o_spec,
        ),
        compiler_params=pltpu.CompilerParams(
            dimension_semantics=("parallel",),
            vmem_limit_bytes=vmem_limit),
        cost_estimate=cost,
    )(x, w_cat, b_cat)


def get_liner_forward(x, w1, b1, w2, b2, w3, b3, w4, b4, *,
                      block_b=512, precision=None):
    """x: (B, dim) f32. w_k: (n_classes, dim) PyTorch layout. b_k: (n_classes,).

    Returns (y1, y2, y3, y4) with y_k = x @ w_k.T + b_k, each (B, n_classes).
    """
    B, D = x.shape
    N = w1.shape[0]

    # --- Fuse the four heads along the class axis (wrapper-side, one-time) ---
    w_cat = jnp.concatenate(
        [jnp.transpose(w).astype(jnp.float32) for w in (w1, w2, w3, w4)],
        axis=1)                                                      # (D, 4N)
    b_cat = jnp.concatenate(
        [b.astype(jnp.float32) for b in (b1, b2, b3, b4)])[None, :]  # (1, 4N)

    # Pad the fused class axis to a multiple of 128 lanes: unmasked vector
    # stores + full MXU column fill.  Padding columns are zero, sliced off.
    n_cat = 4 * N
    n_pad = ((n_cat + 127) // 128) * 128
    if n_pad != n_cat:
        w_cat = jnp.pad(w_cat, ((0, 0), (0, n_pad - n_cat)))
        b_cat = jnp.pad(b_cat, ((0, 0), (0, n_pad - n_cat)))

    tb = _choose_batch_tile(B, block_b)

    # Tile footprint (double-buffered x / out, params once or twice) + slack.
    needed = 4 * (2 * tb * D + 2 * D * n_pad + 2 * n_pad + 2 * tb * n_pad)
    vmem_limit = int(min(max(needed + (2 << 20), 16 << 20), 64 << 20))

    cost = pl.CostEstimate(
        flops=2 * B * D * n_pad,
        transcendentals=0,
        bytes_accessed=4 * (B * D + D * n_pad + n_pad + B * n_pad),
    )

    kwargs = dict(tb=tb, n_pad=n_pad, out_dtype=x.dtype, vmem_limit=vmem_limit,
                  cost=cost, precision=precision)
    try:
        out = _run_fused(x, w_cat, b_cat, single_buffer_params=True, **kwargs)
    except Exception:
        # pipeline_mode=pl.Buffered(1) unsupported on this JAX version: fall
        # back to default double-buffered params (correctness unchanged).
        out = _run_fused(x, w_cat, b_cat, single_buffer_params=False, **kwargs)

    # Split the padded fused output back into the four heads (cheap XLA slices).
    return tuple(out[:, k * N:(k + 1) * N] for k in range(4))


def _reference(x, w, b):
    """Pure-JAX fp32 reference for one head (PyTorch Linear semantics)."""
    return jnp.dot(x, w.T, precision=jax.lax.Precision.HIGHEST) + b[None, :]


if __name__ == "__main__":
    # Small shapes implied by the module: x is (batch, dim) features feeding
    # four classification heads of n_classes each.
    B, D, NC = 2, 32, 16

    key = jax.random.PRNGKey(0)
    kx, *kws = jax.random.split(key, 9)
    x = jax.random.normal(kx, (B, D), dtype=jnp.float32)
    params = []
    for kw, kb in zip(kws[0::2], kws[1::2]):
        params.append(0.1 * jax.random.normal(kw, (NC, D), dtype=jnp.float32))
        params.append(0.1 * jax.random.normal(kb, (NC,), dtype=jnp.float32))
    w1, b1, w2, b2, w3, b3, w4, b4 = params

    outs = jax.block_until_ready(
        get_liner_forward(x, w1, b1, w2, b2, w3, b3, w4, b4))

    assert isinstance(outs, tuple) and len(outs) == 4
    for out, (w, b) in zip(outs, ((w1, b1), (w2, b2), (w3, b3), (w4, b4))):
        assert out.shape == (B, NC)
        ref = _reference(x, w, b)
        # Default (native-MXU) precision: bf16 passes with f32 accumulation.
        assert jnp.allclose(out, ref, atol=2e-2, rtol=2e-2), "mismatch vs ref"

    # Second shape: exercises the multi-tile "parallel" batch grid and the
    # masked final partial batch tile (B not a multiple of the batch tile).
    B2 = 24
    x2 = jax.random.normal(jax.random.PRNGKey(1), (B2, D), dtype=jnp.float32)
    outs2 = jax.block_until_ready(
        get_liner_forward(x2, w1, b1, w2, b2, w3, b3, w4, b4, block_b=16))
    for out, (w, b) in zip(outs2, ((w1, b1), (w2, b2), (w3, b3), (w4, b4))):
        assert out.shape == (B2, NC)
        ref = _reference(x2, w, b)
        assert jnp.allclose(out, ref, atol=2e-2, rtol=2e-2), "mismatch vs ref"

    print("KERNEL_OK")
</pallas_src>

<mosaic_0001>
module attributes {stable_mosaic.version = 11 : i64} {
  func.func @_fused_linear_kernel(%arg0: i32, %arg1: memref<2x32xf32, #tpu.memory_space<vmem>>, %arg2: memref<32x128xf32, #tpu.memory_space<vmem>>, %arg3: memref<1x128xf32, #tpu.memory_space<vmem>>, %arg4: memref<2x128xf32, #tpu.memory_space<vmem>>) attributes {dimension_semantics = [#tpu.dimension_semantics<parallel>], iteration_bounds = array<i64: 1>, scalar_prefetch = 0 : i64, scratch_operands = 0 : i64, tpu.core_type = #tpu.core_type<tc>, window_params = [{transform_indices = @transform_0, window_bounds = array<i64: 2, 32>}, {pipeline_mode = #tpu.pipeline_mode<synchronous>, transform_indices = @transform_1, window_bounds = array<i64: 32, 128>}, {pipeline_mode = #tpu.pipeline_mode<synchronous>, transform_indices = @transform_2, window_bounds = array<i64: 1, 128>}, {transform_indices = @transform_3, window_bounds = array<i64: 2, 128>}]} {
    %c0 = arith.constant 0 : index
    %c0_0 = arith.constant 0 : index
    %0 = vector.load %arg1[%c0, %c0_0] : memref<2x32xf32, #tpu.memory_space<vmem>>, vector<2x32xf32>
    %c0_1 = arith.constant 0 : index
    %c0_2 = arith.constant 0 : index
    %1 = vector.load %arg2[%c0_1, %c0_2] : memref<32x128xf32, #tpu.memory_space<vmem>>, vector<32x128xf32>
    %cst = arith.constant dense<0.000000e+00> : vector<2x128xf32>
    %2 = tpu.matmul %0, %1, %cst {dimension_numbers = #tpu.dot_dimension_numbers<[1], [0], [0], [1], [0, 0, 1, 1], [], []>} : vector<2x32xf32>, vector<32x128xf32>, vector<2x128xf32> -> vector<2x128xf32>
    %c0_3 = arith.constant 0 : index
    %c0_4 = arith.constant 0 : index
    %3 = vector.load %arg3[%c0_3, %c0_4] : memref<1x128xf32, #tpu.memory_space<vmem>>, vector<1x128xf32>
    %4 = vector.broadcast %3 : vector<1x128xf32> to vector<2x128xf32>
    %5 = arith.addf %2, %4 : vector<2x128xf32>
    %c0_5 = arith.constant 0 : index
    %c0_6 = arith.constant 0 : index
    %6 = vector.load %arg4[%c0_5, %c0_6] : memref<2x128xf32, #tpu.memory_space<vmem>>, vector<2x128xf32>
    tpu.vector_store %arg4[%c0_5, %c0_6], %5 {strides = array<i32>} : memref<2x128xf32, #tpu.memory_space<vmem>>, vector<2x128xf32>,
    return
  }
  func.func @transform_0(%arg0: i32) -> (i32, i32) {
    %c0_i32 = arith.constant 0 : i32
    %c0_i32_0 = arith.constant 0 : i32
    return %arg0, %c0_i32 : i32, i32
  }
  func.func @transform_1(%arg0: i32) -> (i32, i32) {
    %c0_i32 = arith.constant 0 : i32
    %c0_i32_0 = arith.constant 0 : i32
    %c0_i32_1 = arith.constant 0 : i32
    return %c0_i32, %c0_i32_0 : i32, i32
  }
  func.func @transform_2(%arg0: i32) -> (i32, i32) {
    %c0_i32 = arith.constant 0 : i32
    %c0_i32_0 = arith.constant 0 : i32
    %c0_i32_1 = arith.constant 0 : i32
    return %c0_i32, %c0_i32_0 : i32, i32
  }
  func.func @transform_3(%arg0: i32) -> (i32, i32) {
    %c0_i32 = arith.constant 0 : i32
    %c0_i32_0 = arith.constant 0 : i32
    return %arg0, %c0_i32 : i32, i32
  }
}

module attributes {stable_mosaic.version = 11 : i64} {
  func.func @_fused_linear_kernel(%arg0: i32, %arg1: memref<2x32xf32, #tpu.memory_space<vmem>>, %arg2: memref<32x128xf32, #tpu.memory_space<vmem>>, %arg3: memref<1x128xf32, #tpu.memory_space<vmem>>, %arg4: memref<2x128xf32, #tpu.memory_space<vmem>>) attributes {dimension_semantics = [#tpu.dimension_semantics<parallel>], iteration_bounds = array<i64: 1>, scalar_prefetch = 0 : i64, scratch_operands = 0 : i64, tpu.core_type = #tpu.core_type<tc>, window_params = [{transform_indices = @transform_0, window_bounds = array<i64: 2, 32>}, {pipeline_mode = #tpu.pipeline_mode<synchronous>, transform_indices = @transform_1, window_bounds = array<i64: 32, 128>}, {pipeline_mode = #tpu.pipeline_mode<synchronous>, transform_indices = @transform_2, window_bounds = array<i64: 1, 128>}, {transform_indices = @transform_3, window_bounds = array<i64: 2, 128>}]} {
    %c0 = arith.constant 0 : index
    %c0_0 = arith.constant 0 : index
    %0 = vector.load %arg1[%c0, %c0_0] : memref<2x32xf32, #tpu.memory_space<vmem>>, vector<2x32xf32>
    %c0_1 = arith.constant 0 : index
    %c0_2 = arith.constant 0 : index
    %1 = vector.load %arg2[%c0_1, %c0_2] : memref<32x128xf32, #tpu.memory_space<vmem>>, vector<32x128xf32>
    %cst = arith.constant dense<0.000000e+00> : vector<2x128xf32>
    %2 = tpu.matmul %0, %1, %cst {dimension_numbers = #tpu.dot_dimension_numbers<[1], [0], [0], [1], [0, 0, 1, 1], [], []>} : vector<2x32xf32>, vector<32x128xf32>, vector<2x128xf32> -> vector<2x128xf32>
    %c0_3 = arith.constant 0 : index
    %c0_4 = arith.constant 0 : index
    %3 = vector.load %arg3[%c0_3, %c0_4] : memref<1x128xf32, #tpu.memory_space<vmem>>, vector<1x128xf32>
    %4 = vector.broadcast %3 : vector<1x128xf32> to vector<2x128xf32>
    %5 = arith.addf %2, %4 : vector<2x128xf32>
    %c0_5 = arith.constant 0 : index
    %c0_6 = arith.constant 0 : index
    %6 = vector.load %arg4[%c0_5, %c0_6] : memref<2x128xf32, #tpu.memory_space<vmem>>, vector<2x128xf32>
    tpu.vector_store %arg4[%c0_5, %c0_6], %5 {strides = array<i32>} : memref<2x128xf32, #tpu.memory_space<vmem>>, vector<2x128xf32>,
    return
  }
  func.func @transform_0(%arg0: i32) -> (i32, i32) {
    %c0_i32 = arith.constant 0 : i32
    %c0_i32_0 = arith.constant 0 : i32
    return %arg0, %c0_i32 : i32, i32
  }
  func.func @transform_1(%arg0: i32) -> (i32, i32) {
    %c0_i32 = arith.constant 0 : i32
    %c0_i32_0 = arith.constant 0 : i32
    %c0_i32_1 = arith.constant 0 : i32
    return %c0_i32, %c0_i32_0 : i32, i32
  }
  func.func @transform_2(%arg0: i32) -> (i32, i32) {
    %c0_i32 = arith.constant 0 : i32
    %c0_i32_0 = arith.constant 0 : i32
    %c0_i32_1 = arith.constant 0 : i32
    return %c0_i32, %c0_i32_0 : i32, i32
  }
  func.func @transform_3(%arg0: i32) -> (i32, i32) {
    %c0_i32 = arith.constant 0 : i32
    %c0_i32_0 = arith.constant 0 : i32
    return %arg0, %c0_i32 : i32, i32
  }
}

</mosaic_0001>

<bundles_post_ra>
// kernel: tpu_custom_call.1
= control target key start
LH: loop header
LB: loop body
LE: loop exit
PB: predicated region body
PF: predicated region fallthrough
CT: control target
= control target key end

     0   :  { %8 = vsyncpa [#allocation3], 0  ;;  %s219_s0 = inlined_call_operand.hbm [shape: f32[2,32], index: 0, kind: input, shape index: {}]   ;;  %s220_s1 = inlined_call_operand.hbm [shape: f32[32,128], index: 1, kind: input, shape index: {}]   ;;  %s221_s2 = inlined_call_operand.vmem [shape: f32[1,128], index: 2, kind: input, shape index: {}]   ;;  %s222_s3 = inlined_call_operand.hbm [shape: f32[2,128], index: 3, kind: output, shape index: {}]  }
   0x1   :  { %9 = vsyncpa [#allocation6], 0 }
   0x2   :  { %10 = vsyncpa [#allocation4], 0  ;;  %s16_s14 = sshll.u32 %s219_s0, 4  ;;  %s182_s15 = smov [#allocation2]   ;;  %s17_s14 = int_to_ptr.hbm [resolvable:$true] %s16_s14 }
   0x3   :  { %s18_s16 = sshll.u32 %s182_s15, 4  ;;  %s26_s19 = sshll.u32 %s220_s1, 4  ;;  %s19_s16 = int_to_ptr.vmem [resolvable:$true] %s18_s16  ;;  %s27_s19 = int_to_ptr.hbm [resolvable:$true] %s26_s19 }
   0x4   :  { %21 = dma.hbm_to_vmem [thread:$0]  %s17_s14, 32, %s19_s16, [#allocation3]  }
   0x5   :  { %s183_s20 = smov [#allocation5]   ;;  %s184_s22 = smov 128  }
   0x6   :  { %s28_s21 = sshll.u32 %s183_s20, 4  ;;  %s185_s23 = smov 8   ;;  %s29_s21 = int_to_ptr.vmem [resolvable:$true] %s28_s21 }
   0x7   :  { %34 = dma.hbm_to_vmem [thread:$0]  %s27_s19, 512, %s29_s21, [#allocation6], %s184_s22, %s184_s22, %s185_s23  }
   0x8   :  { %176 = dma.done.wait [#allocation3], 32  }
   0x9   :  { %177 = vsyncadd [#allocation3], 4294967264 }
   0xa   :  { %178 = dma.done.wait [#allocation6], 512  }
   0xb   :  { %179 = vsyncadd [#allocation6], 4294966784  ;;  %v49_v0 = vld [vmem:[#allocation5 + $0x18] sm:$0xff]  ;;  %v48_v1 = vld [vmem:[#allocation5 + $0x10] sm:$0xff]  ;;  %vm54_vm0 = vcmask 261120   ;;  %s186_s24 = smov [#allocation7]  }
   0xc   :  { %70 = vmatpush.msra.mxu0 %v49_v0  ;;  %v47_v2 = vld [vmem:[#allocation5 + $0x8] sm:$0xff]  ;;  %v46_v3 = vld [vmem:[#allocation5] sm:$0xff]  ;;  %v45_v4 = vld [vmem:[#allocation2] sm:$0x3]  ;;  %s84_s25 = sshll.u32 %s186_s24, 4  ;;  %s86_s28 = sshll.u32 %s222_s3, 4  ;;  %s85_s25 = int_to_ptr.vmem [resolvable:$true] %s84_s25  ;;  %s87_s28 = int_to_ptr.hbm [resolvable:$true] %s86_s28 }
   0xd   :  { %v103_v5 = vld [vmem:[%s221_s2] ss:$0 sm:$0xff] }
   0xe   :  { %71 = vmatpush.msra.mxu0 %v48_v1 }
  0x10   :  { %72 = vmatpush.msra.mxu0 %v47_v2 }
  0x12   :  { %73 = vmatpush.msra.mxu0 %v46_v3 }
  0x13   :  { %97 = vmatmul.msk.f32.vlgmr.msra.gmra.mxu0 %vm54_vm0, %v45_v4 }
  0x90   :  { %v75_v6 = vpop.f32.mrf.mxu0 }
  0x91   :  { %v76_v7 = vadd.f32 %v103_v5, %v75_v6 }
  0x93   :  { %78 = vst [vmem:[#allocation7] sm:$0x3] %v76_v7 }
  0x94   :  { %89 = dma.vmem_to_hbm [thread:$0]  %s85_s25, 32, %s87_s28, [#allocation4]  }
  0x95   :  { %180 = dma.done.wait [#allocation4], 32  }
  0x96   :  { %181 = vsyncadd [#allocation4], 4294967264 }
  0x97   :  { %94 = vsyncpa [#allocation3], 1 }
  0x98   :  { %95 = vsyncpa [#allocation6], 1 }
  0x99   :  { %96 = vsyncpa [#allocation4], 1 }

// kernel: tpu_custom_call.1
= control target key start
LH: loop header
LB: loop body
LE: loop exit
PB: predicated region body
PF: predicated region fallthrough
CT: control target
= control target key end

     0   :  { %8 = vsyncpa [#allocation3], 0  ;;  %s219_s0 = inlined_call_operand.hbm [shape: f32[2,32], index: 0, kind: input, shape index: {}]   ;;  %s220_s1 = inlined_call_operand.hbm [shape: f32[32,128], index: 1, kind: input, shape index: {}]   ;;  %s221_s2 = inlined_call_operand.vmem [shape: f32[1,128], index: 2, kind: input, shape index: {}]   ;;  %s222_s3 = inlined_call_operand.hbm [shape: f32[2,128], index: 3, kind: output, shape index: {}]  }
   0x1   :  { %9 = vsyncpa [#allocation6], 0 }
   0x2   :  { %10 = vsyncpa [#allocation4], 0  ;;  %s16_s14 = sshll.u32 %s219_s0, 4  ;;  %s182_s15 = smov [#allocation2]   ;;  %s17_s14 = int_to_ptr.hbm [resolvable:$true] %s16_s14 }
   0x3   :  { %s18_s16 = sshll.u32 %s182_s15, 4  ;;  %s26_s19 = sshll.u32 %s220_s1, 4  ;;  %s19_s16 = int_to_ptr.vmem [resolvable:$true] %s18_s16  ;;  %s27_s19 = int_to_ptr.hbm [resolvable:$true] %s26_s19 }
   0x4   :  { %21 = dma.hbm_to_vmem [thread:$0]  %s17_s14, 32, %s19_s16, [#allocation3]  }
   0x5   :  { %s183_s20 = smov [#allocation5]   ;;  %s184_s22 = smov 128  }
   0x6   :  { %s28_s21 = sshll.u32 %s183_s20, 4  ;;  %s185_s23 = smov 8   ;;  %s29_s21 = int_to_ptr.vmem [resolvable:$true] %s28_s21 }
   0x7   :  { %34 = dma.hbm_to_vmem [thread:$0]  %s27_s19, 512, %s29_s21, [#allocation6], %s184_s22, %s184_s22, %s185_s23  }
   0x8   :  { %176 = dma.done.wait [#allocation3], 32  }
   0x9   :  { %177 = vsyncadd [#allocation3], 4294967264 }
   0xa   :  { %178 = dma.done.wait [#allocation6], 512  }
   0xb   :  { %179 = vsyncadd [#allocation6], 4294966784  ;;  %v49_v0 = vld [vmem:[#allocation5 + $0x18] sm:$0xff]  ;;  %v48_v1 = vld [vmem:[#allocation5 + $0x10] sm:$0xff]  ;;  %vm54_vm0 = vcmask 261120   ;;  %s186_s24 = smov [#allocation7]  }
   0xc   :  { %70 = vmatpush.msra.mxu0 %v49_v0  ;;  %v47_v2 = vld [vmem:[#allocation5 + $0x8] sm:$0xff]  ;;  %v46_v3 = vld [vmem:[#allocation5] sm:$0xff]  ;;  %v45_v4 = vld [vmem:[#allocation2] sm:$0x3]  ;;  %s84_s25 = sshll.u32 %s186_s24, 4  ;;  %s86_s28 = sshll.u32 %s222_s3, 4  ;;  %s85_s25 = int_to_ptr.vmem [resolvable:$true] %s84_s25  ;;  %s87_s28 = int_to_ptr.hbm [resolvable:$true] %s86_s28 }
   0xd   :  { %v103_v5 = vld [vmem:[%s221_s2] ss:$0 sm:$0xff] }
   0xe   :  { %71 = vmatpush.msra.mxu0 %v48_v1 }
  0x10   :  { %72 = vmatpush.msra.mxu0 %v47_v2 }
  0x12   :  { %73 = vmatpush.msra.mxu0 %v46_v3 }
  0x13   :  { %97 = vmatmul.msk.f32.vlgmr.msra.gmra.mxu0 %vm54_vm0, %v45_v4 }
  0x90   :  { %v75_v6 = vpop.f32.mrf.mxu0 }
  0x91   :  { %v76_v7 = vadd.f32 %v103_v5, %v75_v6 }
  0x93   :  { %78 = vst [vmem:[#allocation7] sm:$0x3] %v76_v7 }
  0x94   :  { %89 = dma.vmem_to_hbm [thread:$0]  %s85_s25, 32, %s87_s28, [#allocation4]  }
  0x95   :  { %180 = dma.done.wait [#allocation4], 32  }
  0x96   :  { %181 = vsyncadd [#allocation4], 4294967264 }
  0x97   :  { %94 = vsyncpa [#allocation3], 1 }
  0x98   :  { %95 = vsyncpa [#allocation6], 1 }
  0x99   :  { %96 = vsyncpa [#allocation4], 1 }

</bundles_post_ra>
